<compile_context>
chip_gen: v5e
topology: v5e:2x2
jax: 0.10.0
libtpu: 0.0.40
codegen_flags: <defaults>
</compile_context>

<pallas_src>
import functools

import numpy as np
import jax
import jax.numpy as jnp
from jax import lax
from jax.experimental import pallas as pl
from jax.experimental.pallas import tpu as pltpu


_VMEM_LIMIT = 32 * 1024 * 1024          # raises v5e's 16 MiB default, <= v6e/v7x scoped
_ROW_TILES = (32, 16, 8)                # row (sublane) tile candidates
_LANE_TILES = (8192, 4096, 2048, 1024, 512, 256, 128)   # pixel (lane) tile candidates


# ----------------------------------------------------------------------------
# small helpers
# ----------------------------------------------------------------------------
def _round_up(x, m):
    return ((x + m - 1) // m) * m


def _pick_tile(n, candidates):
    for c in candidates:
        if c <= n and n % c == 0:
            return c
    return n


def _pad2d(x, rows, cols):
    r, c = x.shape
    if r == rows and c == cols:
        return x
    return jnp.pad(x, ((0, rows - r), (0, cols - c)))


def _row_grid(n_rows, n_cols):
    rp = _round_up(max(n_rows, 1), 8)
    cp = _round_up(max(n_cols, 1), 128)
    tm = _pick_tile(rp, _ROW_TILES)
    tn = _pick_tile(cp, _LANE_TILES)
    return rp, cp, tm, tn


def _lane_partials(v, lanes=128):
    """(tm, tn) -> (tm, lanes) per-lane partial sums.

    Stays on the VPU (no cross-lane XLU reduce) and keeps the accumulator /
    output lane-dense so stores are full-width vst's."""
    tn = v.shape[1]
    acc = v[:, :lanes]
    for j in range(1, tn // lanes):
        acc = acc + v[:, j * lanes:(j + 1) * lanes]
    return acc


def _sigmoid_focal_terms(x, t, alpha, gamma):
    """Elementwise sigmoid focal loss and sigmoid(x), sharing one exp + one log."""
    e = jnp.exp(-jnp.abs(x))                                    # EUP op 1
    ce = jnp.maximum(x, 0.0) - x * t + jnp.log(1.0 + e)         # EUP op 2 (stable BCE)
    p = jnp.where(x >= 0.0, 1.0, e) / (1.0 + e)                 # sigmoid from same exp
    p_t = p * t + (1.0 - p) * (1.0 - t)
    w = 1.0 - p_t
    focal = ce * (w * w) if gamma == 2.0 else ce * (w ** gamma)
    if alpha >= 0:
        focal = (alpha * t + (1.0 - alpha) * (1.0 - t)) * focal
    return focal, p


# ----------------------------------------------------------------------------
# Pallas kernels
# ----------------------------------------------------------------------------
def _focal_rowsum_kernel(x_ref, t_ref, out_ref, *, alpha, gamma, n_valid, n_pad):
    k = pl.program_id(1)

    @pl.when(k == 0)
    def _():
        out_ref[...] = jnp.zeros_like(out_ref)

    x = x_ref[...].astype(jnp.float32)
    t = t_ref[...].astype(jnp.float32)
    focal, _ = _sigmoid_focal_terms(x, t, alpha, gamma)
    if n_valid != n_pad:                       # static: mask lane padding exactly
        tn = x.shape[1]
        col = k * tn + lax.broadcasted_iota(jnp.int32, x.shape, 1)
        focal = jnp.where(col < n_valid, focal, 0.0)
    out_ref[...] += _lane_partials(focal)


def _focal_dice_rowsum_kernel(x_ref, t_ref, f_ref, pg_ref, ps_ref, gs_ref, *,
                              alpha, gamma, n_valid, n_pad):
    """Fused: focal row-sums + dice (p*g, p, g) row-sums in one HBM pass."""
    k = pl.program_id(1)

    @pl.when(k == 0)
    def _():
        f_ref[...] = jnp.zeros_like(f_ref)
        pg_ref[...] = jnp.zeros_like(pg_ref)
        ps_ref[...] = jnp.zeros_like(ps_ref)
        gs_ref[...] = jnp.zeros_like(gs_ref)

    x = x_ref[...].astype(jnp.float32)
    t = t_ref[...].astype(jnp.float32)
    focal, p = _sigmoid_focal_terms(x, t, alpha, gamma)
    if n_valid != n_pad:
        tn = x.shape[1]
        col = k * tn + lax.broadcasted_iota(jnp.int32, x.shape, 1)
        valid = (col < n_valid).astype(jnp.float32)
        focal = focal * valid
        p = p * valid                          # targets are zero-padded already
    f_ref[...] += _lane_partials(focal)
    pg_ref[...] += _lane_partials(p * t)
    ps_ref[...] += _lane_partials(p)
    gs_ref[...] += _lane_partials(t)


def _vos_dice_rowsum_kernel(prob_ref, gt_ref, pg_ref, ps_ref, gs_ref):
    """Dice sums per (object, row).  The one-hot gt is derived in-kernel from the
    integer class mask and the object-id grid axis (no HBM one-hot copies)."""
    o = pl.program_id(0)
    k = pl.program_id(2)

    @pl.when(k == 0)
    def _():
        pg_ref[...] = jnp.zeros_like(pg_ref)
        ps_ref[...] = jnp.zeros_like(ps_ref)
        gs_ref[...] = jnp.zeros_like(gs_ref)

    p = prob_ref[...].astype(jnp.float32)
    g = (gt_ref[...] == (o + 1)).astype(jnp.float32)
    pg_ref[...] += _lane_partials(p * g)
    ps_ref[...] += _lane_partials(p)
    gs_ref[...] += _lane_partials(g)


def _pixel_ce_kernel(logits_ref, tgt_ref, out_ref):
    """Per-pixel softmax cross entropy.  logits_ref: [C, tm, tn]; tgt_ref int32."""
    num_cls = logits_ref.shape[0]
    t = tgt_ref[...]
    xmax = logits_ref[0].astype(jnp.float32)
    for c in range(1, num_cls):                 # streaming max: O(tile) live regs
        xmax = jnp.maximum(xmax, logits_ref[c].astype(jnp.float32))
    ssum = jnp.zeros_like(xmax)
    gathered = jnp.zeros_like(xmax)
    for c in range(num_cls):
        xc = logits_ref[c].astype(jnp.float32)
        ssum = ssum + jnp.exp(xc - xmax)
        # NOTE: matches F.cross_entropy only for targets in [0, C); out-of-range
        # targets silently contribute logsumexp instead of raising like torch.
        gathered = gathered + jnp.where(t == c, xc, 0.0)
    out_ref[...] = jnp.log(ssum) + xmax - gathered


# ----------------------------------------------------------------------------
# wrappers (pallas_call sites)
# ----------------------------------------------------------------------------
def focal_row_sums(logits, targets, alpha=0.25, gamma=2.0):
    """Row-wise sums of sigmoid focal loss; returns shape (rows,)."""
    m, n = logits.shape
    rp, npad, tm, tn = _row_grid(m, n)
    x = _pad2d(logits, rp, npad)
    t = _pad2d(targets, rp, npad)
    kernel = functools.partial(_focal_rowsum_kernel, alpha=alpha, gamma=gamma,
                               n_valid=n, n_pad=npad)
    out = pl.pallas_call(
        kernel,
        grid=(rp // tm, npad // tn),
        out_shape=jax.ShapeDtypeStruct((rp, 128), jnp.float32),
        in_specs=[pl.BlockSpec((tm, tn), lambda r, k: (r, k)),
                  pl.BlockSpec((tm, tn), lambda r, k: (r, k))],
        out_specs=pl.BlockSpec((tm, 128), lambda r, k: (r, 0)),
        compiler_params=pltpu.CompilerParams(
            dimension_semantics=("parallel", "arbitrary"),
            vmem_limit_bytes=_VMEM_LIMIT),
    )(x, t)
    return jnp.sum(out, axis=1)[:m]


def focal_dice_row_sums(src, tgt, alpha=0.25, gamma=2.0):
    """Fused focal + dice reductions; returns (focal, p*g, p, g) row sums, each (rows,)."""
    m, n = src.shape
    rp, npad, tm, tn = _row_grid(m, n)
    x = _pad2d(src, rp, npad)
    t = _pad2d(tgt, rp, npad)
    kernel = functools.partial(_focal_dice_rowsum_kernel, alpha=alpha, gamma=gamma,
                               n_valid=n, n_pad=npad)
    out_shape = tuple(jax.ShapeDtypeStruct((rp, 128), jnp.float32) for _ in range(4))
    out_specs = tuple(pl.BlockSpec((tm, 128), lambda r, k: (r, 0)) for _ in range(4))
    f, pg, ps, gs = pl.pallas_call(
        kernel,
        grid=(rp // tm, npad // tn),
        out_shape=out_shape,
        in_specs=[pl.BlockSpec((tm, tn), lambda r, k: (r, k)),
                  pl.BlockSpec((tm, tn), lambda r, k: (r, k))],
        out_specs=out_specs,
        compiler_params=pltpu.CompilerParams(
            dimension_semantics=("parallel", "arbitrary"),
            vmem_limit_bytes=_VMEM_LIMIT),
    )(x, t)
    red = lambda a: jnp.sum(a, axis=1)[:m]
    return red(f), red(pg), red(ps), red(gs)


def vos_dice_sums(probs, gt_int):
    """probs: [num_obj, rows, npix] float; gt_int: [rows, npix] int32.
    Returns (p*g, p, g) sums, each of shape (num_obj, rows)."""
    num_obj, m, n = probs.shape
    rp, npad, tm, tn = _row_grid(m, n)
    p = probs
    if (m, n) != (rp, npad):
        p = jnp.pad(probs, ((0, 0), (0, rp - m), (0, npad - n)))
    g = _pad2d(gt_int, rp, npad)
    out_shape = tuple(jax.ShapeDtypeStruct((num_obj, rp, 128), jnp.float32)
                      for _ in range(3))
    out_specs = tuple(pl.BlockSpec((None, tm, 128), lambda o, r, k: (o, r, 0))
                      for _ in range(3))
    pg, ps, gs = pl.pallas_call(
        _vos_dice_rowsum_kernel,
        grid=(num_obj, rp // tm, npad // tn),
        out_shape=out_shape,
        in_specs=[pl.BlockSpec((None, tm, tn), lambda o, r, k: (o, r, k)),
                  pl.BlockSpec((tm, tn), lambda o, r, k: (r, k))],
        out_specs=out_specs,
        compiler_params=pltpu.CompilerParams(
            dimension_semantics=("parallel", "parallel", "arbitrary"),
            vmem_limit_bytes=_VMEM_LIMIT),
    )(p, g)
    red = lambda a: jnp.sum(a, axis=2)[:, :m]
    return red(pg), red(ps), red(gs)


def pixel_ce(logits_cmn, targets_mn_int):
    """Per-pixel softmax CE.  logits: [C, rows, npix]; targets: [rows, npix] int32."""
    c, m, n = logits_cmn.shape
    rp = _round_up(m, 8)
    npad = _round_up(n, 128)
    tm = _pick_tile(rp, _ROW_TILES)
    max_tn = max(128, (2 * 1024 * 1024) // (4 * c * tm))   # keep C*tile under ~2 MiB
    cands = tuple(x for x in _LANE_TILES if x <= max_tn) or (128,)
    tn = _pick_tile(npad, cands)
    x = logits_cmn
    if (m, n) != (rp, npad):
        x = jnp.pad(logits_cmn, ((0, 0), (0, rp - m), (0, npad - n)))
    t = _pad2d(targets_mn_int, rp, npad)
    out = pl.pallas_call(
        _pixel_ce_kernel,
        grid=(rp // tm, npad // tn),
        out_shape=jax.ShapeDtypeStruct((rp, npad), jnp.float32),
        in_specs=[pl.BlockSpec((c, tm, tn), lambda r, k: (0, r, k)),
                  pl.BlockSpec((tm, tn), lambda r, k: (r, k))],
        out_specs=pl.BlockSpec((tm, tn), lambda r, k: (r, k)),
        compiler_params=pltpu.CompilerParams(
            dimension_semantics=("parallel", "parallel"),
            vmem_limit_bytes=_VMEM_LIMIT),
    )(x, t)
    return out[:m, :n]


def box_losses_jax(src_boxes, tgt_boxes):
    """L1 + GIoU losses.  Kept in plain JAX: Nb is tiny; the fixed pallas_call
    overhead dwarfs the arithmetic and XLA fuses this fine."""
    s = src_boxes.astype(jnp.float32)
    t = tgt_boxes.astype(jnp.float32)
    l1_sum = jnp.sum(jnp.abs(s - t))

    def to_xyxy(b):
        return (b[:, 0] - 0.5 * b[:, 2], b[:, 1] - 0.5 * b[:, 3],
                b[:, 0] + 0.5 * b[:, 2], b[:, 1] + 0.5 * b[:, 3])

    sx1, sy1, sx2, sy2 = to_xyxy(s)
    tx1, ty1, tx2, ty2 = to_xyxy(t)
    area_s = (sx2 - sx1) * (sy2 - sy1)
    area_t = (tx2 - tx1) * (ty2 - ty1)
    iw = jnp.maximum(jnp.minimum(sx2, tx2) - jnp.maximum(sx1, tx1), 0.0)
    ih = jnp.maximum(jnp.minimum(sy2, ty2) - jnp.maximum(sy1, ty1), 0.0)
    inter = iw * ih
    union = area_s + area_t - inter
    eps = 1e-7                                   # guard degenerate / zero-area boxes
    iou = inter / jnp.maximum(union, eps)
    cw = jnp.maximum(sx2, tx2) - jnp.minimum(sx1, tx1)
    ch = jnp.maximum(sy2, ty2) - jnp.minimum(sy1, ty1)
    area_c = cw * ch
    giou = iou - (area_c - union) / jnp.maximum(area_c, eps)
    return l1_sum, jnp.sum(1.0 - giou)


# ----------------------------------------------------------------------------
# SetCriterion (JAX / Pallas version)
# ----------------------------------------------------------------------------
class SetCriterionPallas:
    def __init__(self, num_classes, losses, eos_coef=0.1, focal_alpha=0.25,
                 weight_dict=None, matcher=None, args=None):
        self.args = args
        self.num_classes = num_classes
        self.matcher = matcher            # indices come precomputed in `outputs`
        self.weight_dict = weight_dict
        self.eos_coef = eos_coef
        self.losses = losses
        self.focal_alpha = focal_alpha
        # registered buffer of the torch module (unused by the sigmoid-focal
        # classification path, kept for parity)
        ew = np.ones(num_classes + 1, dtype=np.float32)
        ew[-1] = eos_coef
        self.empty_weight = jnp.asarray(ew)
        # BootstrappedCE defaults
        self.start_warm, self.end_warm, self.top_p = 0.2, 0.6, 0.15

    # -------------------------- labels --------------------------
    def loss_labels(self, outputs, targets, indices, num_boxes, log=True):
        src_logits = outputs['pred_logits']               # [B, T, Q, K]
        B, nf, nq, K = src_logits.shape
        src_logits2 = src_logits.reshape(B, nf * nq, K)   # 'b t q k -> b (t q) k'

        target_classes = np.full((B, nf * nq), self.num_classes, dtype=np.int32)
        for b, (tgt, (ind_i, ind_j)) in enumerate(zip(targets, indices)):
            valid = np.asarray(tgt['valid'])
            valid_ind = np.nonzero(valid)[0]
            valid_i = valid_ind * nq + np.asarray(ind_i)
            valid_j = valid_ind + np.asarray(ind_j) * nf
            labels = np.asarray(tgt['labels'])
            if self.num_classes == 1:
                target_classes[b, valid_i] = 0
            else:
                target_classes[b, valid_i] = labels[valid_j]

        onehot = jax.nn.one_hot(jnp.asarray(target_classes), self.num_classes + 1,
                                dtype=jnp.float32)[:, :, :-1]        # drop "no-object"
        # focal row-sum is linear in elements, so any row split is exact;
        # (B*nf, nq*K) gives more rows / fuller lanes than (B, nf*nq*K).
        rows = focal_row_sums(src_logits2.reshape(B * nf, nq * K),
                              onehot.reshape(B * nf, nq * K),
                              alpha=self.focal_alpha, gamma=2.0)
        # original: sigmoid_focal_loss(...)*nf*nq == total_sum / num_boxes
        loss_ce = jnp.sum(rows) / num_boxes
        return {'loss_ce': loss_ce}

    # -------------------------- boxes --------------------------
    def loss_boxes(self, outputs, targets, indices, num_boxes):
        src_boxes = outputs['pred_boxes']                  # [B, T, Q, 4]
        src_boxes = jnp.transpose(src_boxes, (0, 2, 1, 3))  # [B, Q, T, 4]
        sel = []
        for b, (ind_i, _) in enumerate(indices):
            for qi in np.asarray(ind_i):
                sel.append(src_boxes[b, int(qi)])          # [T, 4]
        src_sel = jnp.concatenate(sel, axis=0)             # [Npairs*T, 4]
        target_boxes = jnp.concatenate(
            [jnp.asarray(t['boxes'], jnp.float32) for t in targets], axis=0)
        l1_sum, giou_sum = box_losses_jax(src_sel, target_boxes)
        return {'loss_bbox': l1_sum / num_boxes,
                'loss_giou': giou_sum / num_boxes}

    # -------------------------- masks --------------------------
    def _bootstrapped_ce(self, raw_loss, it):
        # raw_loss: per-pixel CE [num_pixels], produced by the Pallas pixel-CE kernel
        if it < self.start_warm:
            return jnp.mean(raw_loss)
        num_pixels = raw_loss.shape[0]
        if it > self.end_warm:
            this_p = self.top_p
        else:
            this_p = self.top_p + (1 - self.top_p) * (
                (self.end_warm - it) / (self.end_warm - self.start_warm))
        k = max(1, int(num_pixels * this_p))
        # TODO(synk): top-k stays in plain JAX (sort-based selection; no clean Pallas TPU op)
        top_vals, _ = jax.lax.top_k(raw_loss, k)
        return jnp.mean(top_vals)

    def loss_masks(self, outputs, targets, indices, num_boxes):
        src_masks = outputs['pred_masks']                  # [B, TM, h, w]
        # nested_tensor_from_tensor_list(size_divisibility=32) == plain stack here
        # because the target masks are already 32-divisible.
        target_masks = jnp.stack(
            [jnp.asarray(t['masks'], jnp.float32) for t in targets], axis=0)  # [B,TM,H,W]
        B, TM, H, W = target_masks.shape
        vos_target_masks = target_masks[:, 1:]             # [B, TV, H, W]
        npix = H * W

        # TODO(synk): fuse this half-pixel bilinear upsample into the focal/dice kernel
        # (static 2x/4x weights) to save one full HBM round-trip of the largest tensor.
        src_masks = jax.image.resize(src_masks, (B, TM, H, W), method='bilinear')

        # rows = B*TM -> full (8,128) tiles and a parallelizable row axis (vs B huge rows)
        f_rows, pg, ps, gs = focal_dice_row_sums(
            src_masks.reshape(B * TM, npix), target_masks.reshape(B * TM, npix),
            alpha=0.25, gamma=2.0)

        losses = {'loss_mask': jnp.sum(f_rows) / (TM * npix) / num_boxes}
        # dice is defined per batch row over all TM*H*W pixels: the sums are additive,
        # so aggregate the per-(B,TM)-row sums back to per-B before the dice formula.
        pg_b = pg.reshape(B, TM).sum(axis=1)
        ps_b = ps.reshape(B, TM).sum(axis=1)
        gs_b = gs.reshape(B, TM).sum(axis=1)
        dice = 1.0 - (2.0 * pg_b + 1.0) / (ps_b + gs_b + 1.0)
        losses['loss_dice'] = jnp.sum(dice) / num_boxes

        if 'vos_logits' in outputs:
            vos_logits = outputs['vos_logits']             # [B, TV, C, H, W]
            vos_prob = outputs['vos_prob']                 # [B, TV, num_obj, H, W]
            b, t, C = vos_logits.shape[:3]
            num_obj = vos_prob.shape[2]

            # integer class mask (== .long()), shared by pixel-CE and vos-dice kernels
            gt_int = vos_target_masks.astype(jnp.int32).reshape(b * t, npix)

            # per-pixel CE for all (batch, frame) pairs in one tiled Pallas call
            logits_cmn = jnp.transpose(vos_logits, (2, 0, 1, 3, 4)).reshape(C, b * t, npix)
            raw_ce = pixel_ce(logits_cmn, gt_int).reshape(b, t, npix)

            # vos dice sums: one-hot gt derived in-kernel from gt_int per object id
            probs_ob = jnp.transpose(vos_prob, (2, 0, 1, 3, 4)).reshape(num_obj, b * t, npix)
            pg2, ps2, gs2 = vos_dice_sums(probs_ob, gt_int)          # (num_obj, b*t)
            d = (1.0 - (2.0 * pg2 + 1.0) / (ps2 + gs2 + 1.0)).reshape(num_obj, b, t)

            it = outputs['run_ratio']
            loss_vos = jnp.float32(0.0)
            for j in range(t):
                loss_vos_single = jnp.float32(0.0)
                for i in range(b):
                    l = self._bootstrapped_ce(raw_ce[i, j], it)
                    loss_vos_single = loss_vos_single + l / b
                loss_vos_single = loss_vos_single + jnp.mean(d[:, :, j])
                loss_vos = loss_vos + loss_vos_single
            losses['loss_vos'] = loss_vos
        return losses

    # -------------------------- dispatch --------------------------
    def get_loss(self, loss, outputs, targets, indices, num_boxes, **kwargs):
        loss_map = {'labels': self.loss_labels, 'boxes': self.loss_boxes,
                    'masks': self.loss_masks}
        return loss_map[loss](outputs, targets, indices, num_boxes, **kwargs)

    def forward(self, outputs, targets):
        indices = outputs['main_matcher_index']
        aux_indices = outputs.get('aux_matcher_index', [])
        target_valid = np.concatenate([np.asarray(t['valid']).reshape(-1) for t in targets])
        num_boxes = float(max(float(target_valid.sum()), 1.0))   # world_size == 1
        losses = {}
        for loss in self.losses:
            losses.update(self.get_loss(loss, outputs, targets, indices, num_boxes))
        if 'aux_outputs' in outputs:
            for i, aux_outputs in enumerate(outputs['aux_outputs']):
                ind = aux_indices[i]
                for loss in self.losses:
                    kwargs = {'log': False} if loss == 'labels' else {}
                    l_dict = self.get_loss(loss, aux_outputs, targets, ind, num_boxes,
                                           **kwargs)
                    losses.update({k + f'_{i}': v for k, v in l_dict.items()})
        return losses


# ----------------------------------------------------------------------------
# Demo
# ----------------------------------------------------------------------------
if __name__ == "__main__":
    B, T, Q, K = 2, 2, 4, 3          # batch, frames, queries, num_classes
    TM = 3                           # mask frames (first one is the "memory" frame)
    TV = TM - 1                      # vos frames
    hm, wm = 16, 16                  # pred-mask resolution (upsampled to H, W)
    H, W = 32, 32                    # target mask resolution (divisible by 32)
    C_vos, num_obj = 2, 1

    key = jax.random.PRNGKey(0)
    k1, k2, k3, k4, k5, k6, k7, k8 = jax.random.split(key, 8)

    pred_logits = jax.random.normal(k1, (B, T, Q, K), jnp.float32)
    pred_boxes = jnp.concatenate(
        [jax.random.uniform(k2, (B, T, Q, 2), jnp.float32, 0.3, 0.7),
         jax.random.uniform(k3, (B, T, Q, 2), jnp.float32, 0.1, 0.4)], axis=-1)
    pred_masks = jax.random.normal(k4, (B, TM, hm, wm), jnp.float32)
    vos_logits = jax.random.normal(k5, (B, TV, C_vos, H, W), jnp.float32)
    vos_prob = jax.nn.softmax(vos_logits, axis=2)[:, :, 1:]   # drop background channel

    tgt_masks = (jax.random.uniform(k6, (B, TM, H, W)) > 0.6).astype(jnp.float32)
    tgt_boxes = jnp.concatenate(
        [jax.random.uniform(k7, (B, T, 2), jnp.float32, 0.3, 0.7),
         jax.random.uniform(k8, (B, T, 2), jnp.float32, 0.1, 0.4)], axis=-1)

    targets = [
        {'labels': np.array([2, 0]), 'boxes': tgt_boxes[0],
         'valid': np.array([1, 1]), 'masks': tgt_masks[0]},
        {'labels': np.array([1, 1]), 'boxes': tgt_boxes[1],
         'valid': np.array([1, 0]), 'masks': tgt_masks[1]},
    ]
    # precomputed hungarian matcher result: (src query idx, tgt idx) per batch element
    indices = [(np.array([1]), np.array([0])), (np.array([2]), np.array([0]))]

    outputs = {
        'pred_logits': pred_logits,
        'pred_boxes': pred_boxes,
        'pred_masks': pred_masks,
        'vos_logits': vos_logits,
        'vos_prob': vos_prob,
        'run_ratio': 0.5,
        'main_matcher_index': indices,
        'aux_matcher_index': [],
    }

    criterion = SetCriterionPallas(num_classes=K, losses=['labels', 'boxes', 'masks'],
                                   eos_coef=0.1, focal_alpha=0.25)
    losses = criterion.forward(outputs, targets)
    losses = jax.block_until_ready(losses)

    for name, v in losses.items():
        assert np.isfinite(np.asarray(v)).all(), f"non-finite loss: {name}"
    print("KERNEL_OK")
</pallas_src>

<mosaic_0001>
module attributes {stable_mosaic.version = 11 : i64} {
  func.func @_focal_rowsum_kernel(%arg0: i32, %arg1: i32, %arg2: memref<8x128xf32, #tpu.memory_space<vmem>>, %arg3: memref<8x128xf32, #tpu.memory_space<vmem>>, %arg4: memref<8x128xf32, #tpu.memory_space<vmem>>) attributes {dimension_semantics = [#tpu.dimension_semantics<parallel>, #tpu.dimension_semantics<arbitrary>], iteration_bounds = array<i64: 1, 1>, scalar_prefetch = 0 : i64, scratch_operands = 0 : i64, tpu.core_type = #tpu.core_type<tc>, window_params = [{transform_indices = @transform_0, window_bounds = array<i64: 8, 128>}, {transform_indices = @transform_1, window_bounds = array<i64: 8, 128>}, {transform_indices = @transform_2, window_bounds = array<i64: 8, 128>}]} {
    %c0_i32 = arith.constant 0 : i32
    %0 = arith.cmpi eq, %arg1, %c0_i32 : i32
    %1 = arith.extui %0 : i1 to i32
    %c0_i32_0 = arith.constant 0 : i32
    %2 = arith.cmpi ne, %1, %c0_i32_0 : i32
    scf.if %2 {
      %cst_20 = arith.constant 0.000000e+00 : f32
      %54 = vector.broadcast %cst_20 : f32 to vector<8x128xf32>
      %c0_21 = arith.constant 0 : index
      %c0_22 = arith.constant 0 : index
      %55 = vector.load %arg4[%c0_21, %c0_22] : memref<8x128xf32, #tpu.memory_space<vmem>>, vector<8x128xf32>
      tpu.vector_store %arg4[%c0_21, %c0_22], %54 {strides = array<i32>} : memref<8x128xf32, #tpu.memory_space<vmem>>, vector<8x128xf32>,
    } else {
    }
    %c0 = arith.constant 0 : index
    %c0_1 = arith.constant 0 : index
    %3 = vector.load %arg2[%c0, %c0_1] : memref<8x128xf32, #tpu.memory_space<vmem>>, vector<8x128xf32>
    %c0_2 = arith.constant 0 : index
    %c0_3 = arith.constant 0 : index
    %4 = vector.load %arg3[%c0_2, %c0_3] : memref<8x128xf32, #tpu.memory_space<vmem>>, vector<8x128xf32>
    %5 = math.absf %3 : vector<8x128xf32>
    %cst = arith.constant 0.000000e+00 : f32
    %6 = vector.broadcast %cst : f32 to vector<8x128xf32>
    %7 = arith.subf %6, %5 : vector<8x128xf32>
    %8 = math.exp %7 : vector<8x128xf32>
    %cst_4 = arith.constant 0.000000e+00 : f32
    %9 = vector.broadcast %cst_4 : f32 to vector<8x128xf32>
    %10 = arith.maximumf %3, %9 : vector<8x128xf32>
    %11 = arith.mulf %3, %4 : vector<8x128xf32>
    %12 = arith.subf %10, %11 : vector<8x128xf32>
    %cst_5 = arith.constant 1.000000e+00 : f32
    %13 = vector.broadcast %cst_5 : f32 to vector<8x128xf32>
    %14 = arith.addf %13, %8 : vector<8x128xf32>
    %15 = math.log %14 : vector<8x128xf32>
    %16 = arith.addf %12, %15 : vector<8x128xf32>
    %cst_6 = arith.constant 0.000000e+00 : f32
    %17 = vector.broadcast %cst_6 : f32 to vector<8x128xf32>
    %18 = arith.cmpf oge, %3, %17 : vector<8x128xf32>
    %cst_7 = arith.constant 1.000000e+00 : f32
    %19 = vector.broadcast %cst_7 : f32 to vector<8x128xf32>
    %20 = arith.select %18, %19, %8 : vector<8x128xi1>, vector<8x128xf32>
    %cst_8 = arith.constant 1.000000e+00 : f32
    %21 = vector.broadcast %cst_8 : f32 to vector<8x128xf32>
    %22 = arith.addf %21, %8 : vector<8x128xf32>
    %23 = arith.divf %20, %22 : vector<8x128xf32>
    %24 = arith.mulf %23, %4 : vector<8x128xf32>
    %cst_9 = arith.constant 1.000000e+00 : f32
    %25 = vector.broadcast %cst_9 : f32 to vector<8x128xf32>
    %26 = arith.subf %25, %23 : vector<8x128xf32>
    %cst_10 = arith.constant 1.000000e+00 : f32
    %27 = vector.broadcast %cst_10 : f32 to vector<8x128xf32>
    %28 = arith.subf %27, %4 : vector<8x128xf32>
    %29 = arith.mulf %26, %28 : vector<8x128xf32>
    %30 = arith.addf %24, %29 : vector<8x128xf32>
    %cst_11 = arith.constant 1.000000e+00 : f32
    %31 = vector.broadcast %cst_11 : f32 to vector<8x128xf32>
    %32 = arith.subf %31, %30 : vector<8x128xf32>
    %33 = arith.mulf %32, %32 : vector<8x128xf32>
    %34 = arith.mulf %16, %33 : vector<8x128xf32>
    %cst_12 = arith.constant 2.500000e-01 : f32
    %35 = vector.broadcast %cst_12 : f32 to vector<8x128xf32>
    %36 = arith.mulf %35, %4 : vector<8x128xf32>
    %cst_13 = arith.constant 1.000000e+00 : f32
    %37 = vector.broadcast %cst_13 : f32 to vector<8x128xf32>
    %38 = arith.subf %37, %4 : vector<8x128xf32>
    %cst_14 = arith.constant 7.500000e-01 : f32
    %39 = vector.broadcast %cst_14 : f32 to vector<8x128xf32>
    %40 = arith.mulf %39, %38 : vector<8x128xf32>
    %41 = arith.addf %36, %40 : vector<8x128xf32>
    %42 = arith.mulf %41, %34 : vector<8x128xf32>
    %c128_i32 = arith.constant 128 : i32
    %43 = arith.muli %arg1, %c128_i32 : i32
    %44 = tpu.iota {dimensions = array<i32: 1>} : vector<8x128xi32>
    %45 = vector.broadcast %43 : i32 to vector<8x128xi32>
    %46 = arith.addi %45, %44 : vector<8x128xi32>
    %c12_i32 = arith.constant 12 : i32
    %47 = vector.broadcast %c12_i32 : i32 to vector<8x128xi32>
    %48 = arith.cmpi slt, %46, %47 : vector<8x128xi32>
    %cst_15 = arith.constant 0.000000e+00 : f32
    %49 = vector.broadcast %cst_15 : f32 to vector<8x128xf32>
    %50 = arith.select %48, %42, %49 : vector<8x128xi1>, vector<8x128xf32>
    %c0_16 = arith.constant 0 : index
    %c0_17 = arith.constant 0 : index
    %51 = vector.load %arg4[%c0_16, %c0_17] : memref<8x128xf32, #tpu.memory_space<vmem>>, vector<8x128xf32>
    %52 = arith.addf %51, %50 : vector<8x128xf32>
    %c0_18 = arith.constant 0 : index
    %c0_19 = arith.constant 0 : index
    %53 = vector.load %arg4[%c0_18, %c0_19] : memref<8x128xf32, #tpu.memory_space<vmem>>, vector<8x128xf32>
    tpu.vector_store %arg4[%c0_18, %c0_19], %52 {strides = array<i32>} : memref<8x128xf32, #tpu.memory_space<vmem>>, vector<8x128xf32>,
    return
  }
  func.func @transform_0(%arg0: i32, %arg1: i32) -> (i32, i32) {
    %c0_i32 = arith.constant 0 : i32
    return %arg0, %arg1 : i32, i32
  }
  func.func @transform_1(%arg0: i32, %arg1: i32) -> (i32, i32) {
    %c0_i32 = arith.constant 0 : i32
    return %arg0, %arg1 : i32, i32
  }
  func.func @transform_2(%arg0: i32, %arg1: i32) -> (i32, i32) {
    %c0_i32 = arith.constant 0 : i32
    %c0_i32_0 = arith.constant 0 : i32
    return %arg0, %c0_i32 : i32, i32
  }
}

</mosaic_0001>

<bundles_post_ra>
// kernel: tpu_custom_call.1
= control target key start
LH: loop header
LB: loop body
LE: loop exit
PB: predicated region body
PF: predicated region fallthrough
CT: control target
= control target key end

     0   :  { %7 = vsyncpa [#allocation3], 0  ;;  %s230_s0 = inlined_call_operand.hbm [shape: f32[8,128], index: 0, kind: input, shape index: {}]   ;;  %s231_s1 = inlined_call_operand.hbm [shape: f32[8,128], index: 1, kind: input, shape index: {}]   ;;  %s232_s2 = inlined_call_operand.hbm [shape: f32[8,128], index: 2, kind: output, shape index: {}]  }
   0x1   :  { %8 = vsyncpa [#allocation6], 0 }
   0x2   :  { %9 = vsyncpa [#allocation4], 0  ;;  %s15_s11 = sshll.u32 %s230_s0, 4  ;;  %s203_s12 = smov [#allocation2]   ;;  %s16_s11 = int_to_ptr.hbm [resolvable:$true] %s15_s11 }
   0x3   :  { %s17_s13 = sshll.u32 %s203_s12, 4  ;;  %s26_s16 = sshll.u32 %s231_s1, 4  ;;  %s18_s13 = int_to_ptr.vmem [resolvable:$true] %s17_s13  ;;  %s27_s16 = int_to_ptr.hbm [resolvable:$true] %s26_s16 }
   0x4   :  { %20 = dma.hbm_to_vmem [thread:$0]  %s16_s11, 128, %s18_s13, [#allocation3]  }
   0x5   :  { %s204_s17 = smov [#allocation5]  }
   0x6   :  { %s28_s18 = sshll.u32 %s204_s17, 4  ;;  %s29_s18 = int_to_ptr.vmem [resolvable:$true] %s28_s18 }
   0x7   :  { %31 = dma.hbm_to_vmem [thread:$0]  %s27_s16, 128, %s29_s18, [#allocation6]  }
   0x8   :  { %197 = dma.done.wait [#allocation3], 128  }
   0x9   :  { %198 = vsyncadd [#allocation3], 4294967168 }
   0xa   :  { %199 = dma.done.wait [#allocation6], 128  }
   0xb   :  { %200 = vsyncadd [#allocation6], 4294967168  ;;  %v45_v0 = vld [vmem:[#allocation2] sm:$0xff]  ;;  %v46_v14 = vld [vmem:[#allocation5] sm:$0xff]  ;;  %v88_v28 = vlaneseq  ;;  %s205_s0 = smov [#allocation7]   ;;  %s104_s21 = sshll.u32 %s232_s2, 4  ;;  %s105_s21 = int_to_ptr.hbm [resolvable:$true] %s104_s21 }
   0xc   :  { %v47_v1 = vand.u32 2147483647, %v45_v0  ;;  %vm58_vm2 = vcmp.ge.f32.partialorder %v45_v0, 0.0  ;;  %v51_v18 = vmax.f32 %v45_v0, 0.0  ;;  %v52_v19 = vmul.f32 %v46_v14, %v45_v0  ;;  %s102_s1 = sshll.u32 %s205_s0, 4  ;;  %s103_s1 = int_to_ptr.vmem [resolvable:$true] %s102_s1 }
   0xd   :  { %v77_v21 = vsub.f32 1.0, %v46_v14  ;;  %v83_v30 = vmul.f32 0.25, %v46_v14  ;;  %v89_v34 = vand.u32 127, %v88_v28 }
   0xe   :  { %v48_v2 = vsub.f32 0.0, %v47_v1  ;;  %v53_v25 = vsub.f32 %v51_v18, %v52_v19 }
   0xf   :  { %v84_v31 = vmul.f32 0.75, %v77_v21  ;;  %vm92_vm5 = vcmp.lt.s32.totalorder %v89_v34, 12 }
  0x10   :  { %v49_v3 = vmul.f32 1.442695, %v48_v2 }
  0x11   :  { %v85_v36 = vadd.f32 %v84_v31, %v83_v30 }
  0x12   :  { %119 = vpow2.f32 %v49_v3 }
  0x18   :  { %v120_v4 = vpop.eup %119 }
  0x19   :  { %v54_v5 = vadd.f32 1.0, %v120_v4  ;;  %v59_v15 = vsel %vm58_vm2, 1.0, %v120_v4 }
  0x1b   :  { %121 = vrcp.f32 %v54_v5  ;;  %v71_v8 = vand.u32 2147483648, %v54_v5  ;;  %vm65_vm0 = vweird.f32 %v54_v5  ;;  %v69_v10 = vand.u32 2147483647, %v54_v5 }
  0x1c   :  { %123 = vlog2.f32 %v54_v5 }
  0x1d   :  { %v72_v12 = vor.u32 1.1754944e-38, %v71_v8  ;;  %vm70_vm4 = vcmp.eq.f32.partialorder %v69_v10, 8.507059e+37 }
  0x21   :  { %v122_v6 = vpop.eup %121 }
  0x22   :  { %v61_v7 = vmul.f32 %v122_v6, %v54_v5  ;;  %vm66_vm1 = vweird.f32 %v122_v6  ;;  %v124_v22 = vpop.eup %123 }
  0x23   :  { %vm67_vm3 = vmor %vm65_vm0, %vm66_vm1  ;;  %v56_v26 = vmul.f32 0.6931472, %v124_v22 }
  0x24   :  { %v62_v9 = vsub.f32 1.0, %v61_v7 }
  0x25   :  { %v57_v32 = vadd.f32 %v56_v26, %v53_v25 }
  0x26   :  { %v63_v11 = vmul.f32 %v122_v6, %v62_v9 }
  0x28   :  { %v64_v13 = vadd.f32 %v122_v6, %v63_v11 }
  0x2a   :  { %v68_v16 = vsel %vm67_vm3, %v122_v6, %v64_v13 }
  0x2b   :  { %v73_v17 = vsel %vm70_vm4, %v72_v12, %v68_v16 }
  0x2c   :  { %v74_v20 = vmul.f32 %v73_v17, %v59_v15 }
  0x2e   :  { %v75_v23 = vmul.f32 %v74_v20, %v46_v14  ;;  %v76_v24 = vsub.f32 1.0, %v74_v20 }
  0x30   :  { %v78_v27 = vmul.f32 %v77_v21, %v76_v24 }
  0x32   :  { %v79_v29 = vadd.f32 %v78_v27, %v75_v23 }
  0x34   :  { %v80_v33 = vsub.f32 1.0, %v79_v29 }
  0x36   :  { %v81_v35 = vmul.f32 %v80_v33, %v80_v33 }
  0x38   :  { %v82_v37 = vmul.f32 %v81_v35, %v57_v32 }
  0x3a   :  { %v86_v38 = vmul.f32 %v85_v36, %v82_v37 }
  0x3c   :  { %v93_v39 = vsel %vm92_vm5, %v86_v38, 0.0 }
  0x3d   :  { %96 = vst [vmem:[#allocation7] sm:$0xff] %v93_v39 }
  0x3e   :  { %107 = dma.vmem_to_hbm [thread:$0]  %s103_s1, 128, %s105_s21, [#allocation4]  }
  0x3f   :  { %201 = dma.done.wait [#allocation4], 128  }
  0x40   :  { %202 = vsyncadd [#allocation4], 4294967168 }
  0x41   :  { %112 = vsyncpa [#allocation3], 1 }
  0x42   :  { %113 = vsyncpa [#allocation6], 1 }
  0x43   :  { %114 = vsyncpa [#allocation4], 1 }

</bundles_post_ra>
